<compile_context>
chip_gen: v5e
topology: v5e:2x2
jax: 0.10.0
libtpu: 0.0.40
codegen_flags: <defaults>
</compile_context>

<pallas_src>
import functools
import math

import jax
import jax.numpy as jnp
from jax import lax
from jax.experimental import pallas as pl
from jax.experimental.pallas import tpu as pltpu


# ----------------------------------------------------------------------------
# hardware-aware tiling helpers
# ----------------------------------------------------------------------------
@functools.lru_cache(maxsize=1)
def _hw_info():
    try:
        cap = int(getattr(pltpu.get_tpu_info(), "vmem_capacity_bytes", 0))
    except Exception:
        cap = 0
    if cap <= 0:
        cap = 64 << 20                       # conservative (v7x-sized) default
    small = cap < (100 << 20)                # v7x: 64 MiB physical VMEM
    return {
        "vmem_limit": min(int(cap * 3 // 4), 96 << 20),
        "ts": 512 if small else 1024,        # projection sequence-tile target
        "tn": 512,                           # matmul N-tile target
        "tk": 256 if small else 512,         # matmul K-tile target
        "tq": 256,                           # attention query-tile target
        "tkv": 256 if small else 512,        # flash KV-tile target
    }


def _pick_tile(dim, target, aligns=(128, 8)):
    """Largest divisor of `dim` <= target that is a multiple of one of `aligns`
    (tried in order); falls back to the full dimension (always a legal block)."""
    if dim <= target:
        return dim
    for align in aligns:
        t = (target // align) * align
        while t >= align:
            if dim % t == 0:
                return t
            t -= align
    return dim


def _pick_heads_block(H, d_k, per_head_bytes, budget):
    """Heads per attention grid step.  hb must keep the (1, Tq, hb*d_k) blocks
    lane-legal (hb*d_k % 128 == 0, or hb == H) and fit the VMEM budget."""
    valid = [hb for hb in range(1, H + 1)
             if H % hb == 0 and (hb == H or (hb * d_k) % 128 == 0)]
    for hb in sorted(valid, reverse=True):
        if hb * per_head_bytes <= budget:
            return hb
    return min(valid)


def _cap_heads_block(H, d_k, hb):
    """v7x megacore: prefer a smaller legal hb so the grid has >= 2 parallel steps."""
    smaller = [h for h in range(1, hb)
               if H % h == 0 and (h * d_k) % 128 == 0]
    return max(smaller) if smaller else hb


# ----------------------------------------------------------------------------
# Kernel 1: generic tiled linear  y = x @ W + b   (bf16 MXU, f32 accumulate)
#   grid = (B, S-tiles, N-tiles, K-tiles); K is the reduction axis.
# ----------------------------------------------------------------------------
def _linear_kernel(x_ref, w_ref, b_ref, o_ref, acc_ref):
    kk = pl.program_id(3)

    @pl.when(kk == 0)
    def _():
        acc_ref[...] = jnp.zeros_like(acc_ref)

    acc_ref[...] += jnp.dot(x_ref[0].astype(jnp.bfloat16), w_ref[...],
                            preferred_element_type=jnp.float32)

    @pl.when(kk == pl.num_programs(3) - 1)
    def _():
        o_ref[0] = (acc_ref[...] + b_ref[...]).astype(o_ref.dtype)


def linear(x, w, b, *, out_dtype):
    """x: (B, S, Din), w: (Din, Dout) bf16 (pre-cast once), b: (1, Dout) f32."""
    B, S, Din = x.shape
    Dout = w.shape[1]
    hw = _hw_info()
    ts = _pick_tile(S, hw["ts"], (128, 8))
    tn = _pick_tile(Dout, hw["tn"], (128,))
    tk = _pick_tile(Din, hw["tk"], (128,))
    grid = (B, S // ts, Dout // tn, Din // tk)

    flops = 2 * B * S * Din * Dout
    bytes_accessed = int(B * S * Din * x.dtype.itemsize * (Dout // tn)
                         + Din * Dout * 2 * B
                         + B * S * Dout * jnp.dtype(out_dtype).itemsize)

    return pl.pallas_call(
        _linear_kernel,
        grid=grid,
        in_specs=[
            pl.BlockSpec((1, ts, tk), lambda b, si, j, kk: (b, si, kk)),
            pl.BlockSpec((tk, tn), lambda b, si, j, kk: (kk, j)),
            pl.BlockSpec((1, tn), lambda b, si, j, kk: (0, j)),
        ],
        out_specs=pl.BlockSpec((1, ts, tn), lambda b, si, j, kk: (b, si, j)),
        out_shape=jax.ShapeDtypeStruct((B, S, Dout), out_dtype),
        scratch_shapes=[pltpu.VMEM((ts, tn), jnp.float32)],
        compiler_params=pltpu.CompilerParams(
            dimension_semantics=("parallel", "parallel", "parallel", "arbitrary"),
            vmem_limit_bytes=hw["vmem_limit"]),
        cost_estimate=pl.CostEstimate(flops=flops, transcendentals=0,
                                      bytes_accessed=bytes_accessed),
    )(x, w, b)


# ----------------------------------------------------------------------------
# Kernel 2a: attention (returns softmax weights), full-Sk softmax per Tq tile
#   q/k/v arrive in merged-head layout (B, S, H*d_k), bf16, scale pre-folded.
#   grid = (B, H//hb, Sq-tiles) -- all parallel.
# ----------------------------------------------------------------------------
def _make_attn_weights_kernel(hb, d_k):
    def kernel(q_ref, k_ref, v_ref, o_ref, w_ref):
        ctxs = []
        for i in range(hb):                       # static unroll over heads
            sl = slice(i * d_k, (i + 1) * d_k)
            q_i = q_ref[0, :, sl]                 # (Tq, d_k) bf16, scale folded
            k_i = k_ref[0, :, sl]                 # (Sk, d_k) bf16
            v_i = v_ref[0, :, sl]
            # scores = q @ k^T without an explicit transpose (contract last axes)
            s = lax.dot_general(q_i, k_i, (((1,), (1,)), ((), ())),
                                preferred_element_type=jnp.float32)
            m = jnp.max(s, axis=-1, keepdims=True)
            e = jnp.exp(s - m)
            attn = e * pl.reciprocal(jnp.sum(e, axis=-1, keepdims=True), approx=True)
            ctxs.append(jnp.dot(attn.astype(v_i.dtype), v_i,
                                preferred_element_type=jnp.float32))
            w_ref[0, i] = attn.astype(w_ref.dtype)        # lane-dense (Tq, Sk)
        # single lane-dense (Tq, hb*d_k) store in merged-head layout
        o_ref[0] = jnp.concatenate(ctxs, axis=-1).astype(o_ref.dtype)
    return kernel


def sdpa_with_weights(q, k, v, num_heads, *, weights_dtype=jnp.float32):
    B, Sq, D = q.shape
    Sk = k.shape[1]
    H = num_heads
    d_k = D // H
    hw = _hw_info()
    tq = _pick_tile(Sq, hw["tq"], (128, 8))
    nq = Sq // tq

    w_isz = jnp.dtype(weights_dtype).itemsize
    per_head = (3 * 4 * tq * Sk              # f32 scores / exp temporaries
                + 2 * w_isz * tq * Sk        # double-buffered weights out block
                + 2 * 2 * 2 * Sk * d_k       # double-buffered bf16 K/V blocks
                + 2 * 2 * 2 * tq * d_k)      # bf16 Q in / ctx out blocks
    hb = _pick_heads_block(H, d_k, per_head, hw["vmem_limit"] // 2)
    if B * nq * (H // hb) < 2:               # keep >=2 parallel steps (v7x megacore)
        hb = _cap_heads_block(H, d_k, hb)
    hd = hb * d_k

    flops = 4 * B * H * Sq * Sk * d_k
    bytes_accessed = int(2 * B * Sq * D + 4 * B * Sk * D + 2 * B * Sq * D
                         + w_isz * B * H * Sq * Sk)

    return pl.pallas_call(
        _make_attn_weights_kernel(hb, d_k),
        grid=(B, H // hb, nq),
        in_specs=[
            pl.BlockSpec((1, tq, hd), lambda b, h, qi: (b, qi, h)),
            pl.BlockSpec((1, Sk, hd), lambda b, h, qi: (b, 0, h)),
            pl.BlockSpec((1, Sk, hd), lambda b, h, qi: (b, 0, h)),
        ],
        out_specs=[
            pl.BlockSpec((1, tq, hd), lambda b, h, qi: (b, qi, h)),
            pl.BlockSpec((1, hb, tq, Sk), lambda b, h, qi: (b, h, qi, 0)),
        ],
        out_shape=(
            jax.ShapeDtypeStruct((B, Sq, D), q.dtype),
            jax.ShapeDtypeStruct((B, H, Sq, Sk), weights_dtype),
        ),
        compiler_params=pltpu.CompilerParams(
            dimension_semantics=("parallel", "parallel", "parallel"),
            vmem_limit_bytes=hw["vmem_limit"]),
        cost_estimate=pl.CostEstimate(flops=flops, transcendentals=B * H * Sq * Sk,
                                      bytes_accessed=bytes_accessed),
    )(q, k, v)


# ----------------------------------------------------------------------------
# Kernel 2b: flash attention (no weights output), online softmax over Sk tiles
#   grid = (B, H//hb, Sq-tiles, Sk-tiles); Sk is the "arbitrary" reduction axis.
# ----------------------------------------------------------------------------
def _make_flash_kernel(hb, d_k):
    def kernel(q_ref, k_ref, v_ref, o_ref, m_ref, l_ref, acc_ref):
        ki = pl.program_id(3)

        @pl.when(ki == 0)
        def _():
            m_ref[...] = jnp.full_like(m_ref, -jnp.inf)
            l_ref[...] = jnp.zeros_like(l_ref)
            acc_ref[...] = jnp.zeros_like(acc_ref)

        for i in range(hb):                       # static unroll over heads
            sl = slice(i * d_k, (i + 1) * d_k)
            q_i = q_ref[0, :, sl]
            k_i = k_ref[0, :, sl]
            v_i = v_ref[0, :, sl]
            s = lax.dot_general(q_i, k_i, (((1,), (1,)), ((), ())),
                                preferred_element_type=jnp.float32)
            m_prev = m_ref[i]
            m_new = jnp.maximum(m_prev, jnp.max(s, axis=-1, keepdims=True))
            alpha = jnp.exp(m_prev - m_new)
            p = jnp.exp(s - m_new)
            l_ref[i] = alpha * l_ref[i] + jnp.sum(p, axis=-1, keepdims=True)
            acc_ref[:, sl] = alpha * acc_ref[:, sl] + jnp.dot(
                p.astype(v_i.dtype), v_i, preferred_element_type=jnp.float32)
            m_ref[i] = m_new

        @pl.when(ki == pl.num_programs(3) - 1)
        def _():
            outs = [acc_ref[:, slice(i * d_k, (i + 1) * d_k)]
                    * pl.reciprocal(l_ref[i], approx=True) for i in range(hb)]
            o_ref[0] = jnp.concatenate(outs, axis=-1).astype(o_ref.dtype)
    return kernel


def sdpa_flash(q, k, v, num_heads):
    B, Sq, D = q.shape
    Sk = k.shape[1]
    H = num_heads
    d_k = D // H
    hw = _hw_info()
    tq = _pick_tile(Sq, hw["tq"], (128, 8))
    tkv = _pick_tile(Sk, hw["tkv"], (128, 8))
    nq, nkv = Sq // tq, Sk // tkv

    per_head = (3 * 4 * tq * tkv             # f32 scores / exp temporaries
                + 4 * tq * d_k + 8 * tq      # f32 acc + m/l scratch
                + 2 * 2 * 2 * tkv * d_k      # double-buffered bf16 K/V blocks
                + 2 * 2 * 2 * tq * d_k)      # bf16 Q / ctx blocks
    hb = _pick_heads_block(H, d_k, per_head, hw["vmem_limit"] // 2)
    if B * nq * (H // hb) < 2:
        hb = _cap_heads_block(H, d_k, hb)
    hd = hb * d_k

    flops = 4 * B * H * Sq * Sk * d_k
    bytes_accessed = int(2 * B * Sq * D + 4 * B * Sk * D * max(1, nq) + 2 * B * Sq * D)

    return pl.pallas_call(
        _make_flash_kernel(hb, d_k),
        grid=(B, H // hb, nq, nkv),
        in_specs=[
            pl.BlockSpec((1, tq, hd), lambda b, h, qi, ki: (b, qi, h)),
            pl.BlockSpec((1, tkv, hd), lambda b, h, qi, ki: (b, ki, h)),
            pl.BlockSpec((1, tkv, hd), lambda b, h, qi, ki: (b, ki, h)),
        ],
        out_specs=pl.BlockSpec((1, tq, hd), lambda b, h, qi, ki: (b, qi, h)),
        out_shape=jax.ShapeDtypeStruct((B, Sq, D), q.dtype),
        scratch_shapes=[
            pltpu.VMEM((hb, tq, 1), jnp.float32),
            pltpu.VMEM((hb, tq, 1), jnp.float32),
            pltpu.VMEM((tq, hd), jnp.float32),
        ],
        compiler_params=pltpu.CompilerParams(
            dimension_semantics=("parallel", "parallel", "parallel", "arbitrary"),
            vmem_limit_bytes=hw["vmem_limit"]),
        cost_estimate=pl.CostEstimate(flops=flops,
                                      transcendentals=2 * B * H * Sq * Sk,
                                      bytes_accessed=bytes_accessed),
    )(q, k, v)


# ----------------------------------------------------------------------------
# parameter preparation (one-time) + forward pass
# ----------------------------------------------------------------------------
def prepare_params(params, num_heads):
    """One-time: fold 1/sqrt(d_k) into Wq/bq (in f32), cast weights to bf16,
    reshape biases to (1, D).  Weights are (in, out) so kernels compute x@W+b."""
    D = params["wq"].shape[0]
    d_k = D // num_heads
    scale = 1.0 / math.sqrt(d_k)
    f32 = jnp.float32
    return {
        "wq": (params["wq"] * scale).astype(jnp.bfloat16),
        "bq": (params["bq"] * scale).reshape(1, D).astype(f32),
        "wk": params["wk"].astype(jnp.bfloat16),
        "bk": params["bk"].reshape(1, D).astype(f32),
        "wv": params["wv"].astype(jnp.bfloat16),
        "bv": params["bv"].reshape(1, D).astype(f32),
        "wo": params["wo"].astype(jnp.bfloat16),
        "bo": params["bo"].reshape(1, D).astype(f32),
    }


def multi_head_attention(params, query, key, value, num_heads, *, mask=None,
                         need_weights=True, weights_dtype=jnp.float32):
    """query: (B,Sq,D), key/value: (B,Sk,D).
    Returns (out (B,Sq,D), attn (B,H,Sq,Sk) or None if need_weights=False)."""
    if mask is not None:
        # TODO(synk): attention mask (scores.masked_fill(mask == 0, -inf)) not implemented.
        raise NotImplementedError("mask is not supported by the Pallas kernels")
    B, Sq, D = query.shape
    assert D % num_heads == 0

    # Q/K/V projections: merged-head (B, S, H*d_k) bf16 intermediates; the
    # 1/sqrt(d_k) scale is already folded into wq/bq.
    q = linear(query, params["wq"], params["bq"], out_dtype=jnp.bfloat16)
    k = linear(key, params["wk"], params["bk"], out_dtype=jnp.bfloat16)
    v = linear(value, params["wv"], params["bv"], out_dtype=jnp.bfloat16)

    if need_weights:
        ctx, attn = sdpa_with_weights(q, k, v, num_heads, weights_dtype=weights_dtype)
    else:
        ctx = sdpa_flash(q, k, v, num_heads)
        attn = None

    # ctx is already in the merged-head layout torch's transpose(1,2).view gives.
    out = linear(ctx, params["wo"], params["bo"], out_dtype=query.dtype)
    return out, attn


def init_params(key, d_model):
    """Deterministic synthetic parameters, stored as (in, out)."""
    ks = jax.random.split(key, 8)
    s = 1.0 / math.sqrt(d_model)
    return {
        "wq": jax.random.uniform(ks[0], (d_model, d_model), jnp.float32, -s, s),
        "bq": jax.random.uniform(ks[1], (d_model,), jnp.float32, -s, s),
        "wk": jax.random.uniform(ks[2], (d_model, d_model), jnp.float32, -s, s),
        "bk": jax.random.uniform(ks[3], (d_model,), jnp.float32, -s, s),
        "wv": jax.random.uniform(ks[4], (d_model, d_model), jnp.float32, -s, s),
        "bv": jax.random.uniform(ks[5], (d_model,), jnp.float32, -s, s),
        "wo": jax.random.uniform(ks[6], (d_model, d_model), jnp.float32, -s, s),
        "bo": jax.random.uniform(ks[7], (d_model,), jnp.float32, -s, s),
    }


def _reference_mha(params, query, key, value, num_heads):
    """Pure-JAX f32 reference mirroring the PyTorch module."""
    B, Sq, D = query.shape
    d_k = D // num_heads
    hp = jax.lax.Precision.HIGHEST

    def lin(x, w, b):
        return jnp.einsum('bsk,kn->bsn', x, w, precision=hp) + b

    q = lin(query, params["wq"], params["bq"]).reshape(B, Sq, num_heads, d_k).transpose(0, 2, 1, 3)
    k = lin(key, params["wk"], params["bk"]).reshape(B, -1, num_heads, d_k).transpose(0, 2, 1, 3)
    v = lin(value, params["wv"], params["bv"]).reshape(B, -1, num_heads, d_k).transpose(0, 2, 1, 3)
    scores = jnp.einsum('bhqd,bhkd->bhqk', q, k, precision=hp) / math.sqrt(d_k)
    attn = jax.nn.softmax(scores, axis=-1)
    out = jnp.einsum('bhqk,bhkd->bhqd', attn, v, precision=hp)
    out = out.transpose(0, 2, 1, 3).reshape(B, Sq, D)
    out = jnp.einsum('bsk,kn->bsn', out, params["wo"], precision=hp) + params["bo"]
    return out, attn


if __name__ == "__main__":
    B, S, d_model, num_heads = 2, 8, 32, 4

    root = jax.random.PRNGKey(0)
    k_p, k_q, k_k, k_v = jax.random.split(root, 4)

    raw_params = init_params(k_p, d_model)
    params = prepare_params(raw_params, num_heads)
    query = jax.random.normal(k_q, (B, S, d_model), jnp.float32)
    key = jax.random.normal(k_k, (B, S, d_model), jnp.float32)
    value = jax.random.normal(k_v, (B, S, d_model), jnp.float32)

    # Default path: matches the module contract (returns attention weights).
    out, attn = multi_head_attention(params, query, key, value, num_heads)
    jax.block_until_ready((out, attn))
    assert out.shape == (B, S, d_model)
    assert attn.shape == (B, num_heads, S, S)

    ref_out, ref_attn = _reference_mha(raw_params, query, key, value, num_heads)
    assert jnp.allclose(out, ref_out, rtol=2e-2, atol=3e-2), float(
        jnp.max(jnp.abs(out - ref_out)))
    assert jnp.allclose(attn, ref_attn, rtol=2e-2, atol=2e-2), float(
        jnp.max(jnp.abs(attn - ref_attn)))

    # Flash (no-weights) path.
    out2, attn2 = multi_head_attention(params, query, key, value, num_heads,
                                       need_weights=False)
    jax.block_until_ready(out2)
    assert attn2 is None
    assert jnp.allclose(out2, ref_out, rtol=2e-2, atol=3e-2), float(
        jnp.max(jnp.abs(out2 - ref_out)))

    print("KERNEL_OK")
</pallas_src>

<mosaic_0001>
module attributes {stable_mosaic.version = 11 : i64} {
  func.func @_linear_kernel(%arg0: i32, %arg1: i32, %arg2: i32, %arg3: i32, %arg4: memref<1x8x32xf32, #tpu.memory_space<vmem>>, %arg5: memref<32x32xbf16, #tpu.memory_space<vmem>>, %arg6: memref<1x32xf32, #tpu.memory_space<vmem>>, %arg7: memref<1x8x32xbf16, #tpu.memory_space<vmem>>, %arg8: memref<8x32xf32, #tpu.memory_space<vmem>>) attributes {dimension_semantics = [#tpu.dimension_semantics<parallel>, #tpu.dimension_semantics<parallel>, #tpu.dimension_semantics<parallel>, #tpu.dimension_semantics<arbitrary>], iteration_bounds = array<i64: 2, 1, 1, 1>, scalar_prefetch = 0 : i64, scratch_operands = 1 : i64, tpu.core_type = #tpu.core_type<tc>, window_params = [{transform_indices = @transform_0, window_bounds = array<i64: 1, 8, 32>}, {transform_indices = @transform_1, window_bounds = array<i64: 32, 32>}, {transform_indices = @transform_2, window_bounds = array<i64: 1, 32>}, {transform_indices = @transform_3, window_bounds = array<i64: 1, 8, 32>}]} {
    %c0_i32 = arith.constant 0 : i32
    %0 = arith.cmpi eq, %arg3, %c0_i32 : i32
    %1 = arith.extui %0 : i1 to i32
    %c0_i32_0 = arith.constant 0 : i32
    %2 = arith.cmpi ne, %1, %c0_i32_0 : i32
    scf.if %2 {
      %cst_11 = arith.constant 0.000000e+00 : f32
      %14 = vector.broadcast %cst_11 : f32 to vector<8x32xf32>
      %c0_12 = arith.constant 0 : index
      %c0_13 = arith.constant 0 : index
      %15 = vector.load %arg8[%c0_12, %c0_13] : memref<8x32xf32, #tpu.memory_space<vmem>>, vector<8x32xf32>
      tpu.vector_store %arg8[%c0_12, %c0_13], %14 {strides = array<i32>} : memref<8x32xf32, #tpu.memory_space<vmem>>, vector<8x32xf32>,
    } else {
    }
    %c0 = arith.constant 0 : index
    %c0_1 = arith.constant 0 : index
    %3 = vector.load %arg8[%c0, %c0_1] : memref<8x32xf32, #tpu.memory_space<vmem>>, vector<8x32xf32>
    %c0_2 = arith.constant 0 : index
    %c0_3 = arith.constant 0 : index
    %c0_4 = arith.constant 0 : index
    %4 = vector.load %arg4[%c0_2, %c0_3, %c0_4] : memref<1x8x32xf32, #tpu.memory_space<vmem>>, vector<1x8x32xf32>
    %5 = vector.shape_cast %4 : vector<1x8x32xf32> to vector<8x32xf32>
    %6 = arith.truncf %5 : vector<8x32xf32> to vector<8x32xbf16>
    %c0_5 = arith.constant 0 : index
    %c0_6 = arith.constant 0 : index
    %7 = vector.load %arg5[%c0_5, %c0_6] : memref<32x32xbf16, #tpu.memory_space<vmem>>, vector<32x32xbf16>
    %cst = arith.constant dense<0.000000e+00> : vector<8x32xf32>
    %8 = tpu.matmul %6, %7, %cst {dimension_numbers = #tpu.dot_dimension_numbers<[1], [0], [0], [1], [0, 0, 1, 1], [], []>} : vector<8x32xbf16>, vector<32x32xbf16>, vector<8x32xf32> -> vector<8x32xf32>
    %9 = arith.addf %3, %8 : vector<8x32xf32>
    %c0_7 = arith.constant 0 : index
    %c0_8 = arith.constant 0 : index
    %10 = vector.load %arg8[%c0_7, %c0_8] : memref<8x32xf32, #tpu.memory_space<vmem>>, vector<8x32xf32>
    tpu.vector_store %arg8[%c0_7, %c0_8], %9 {strides = array<i32>} : memref<8x32xf32, #tpu.memory_space<vmem>>, vector<8x32xf32>,
    %c0_i32_9 = arith.constant 0 : i32
    %11 = arith.cmpi eq, %arg3, %c0_i32_9 : i32
    %12 = arith.extui %11 : i1 to i32
    %c0_i32_10 = arith.constant 0 : i32
    %13 = arith.cmpi ne, %12, %c0_i32_10 : i32
    scf.if %13 {
      %c0_11 = arith.constant 0 : index
      %c0_12 = arith.constant 0 : index
      %14 = vector.load %arg8[%c0_11, %c0_12] : memref<8x32xf32, #tpu.memory_space<vmem>>, vector<8x32xf32>
      %c0_13 = arith.constant 0 : index
      %c0_14 = arith.constant 0 : index
      %15 = vector.load %arg6[%c0_13, %c0_14] : memref<1x32xf32, #tpu.memory_space<vmem>>, vector<1x32xf32>
      %16 = vector.broadcast %15 : vector<1x32xf32> to vector<8x32xf32>
      %17 = arith.addf %14, %16 : vector<8x32xf32>
      %18 = arith.truncf %17 : vector<8x32xf32> to vector<8x32xbf16>
      %c0_15 = arith.constant 0 : index
      %c0_16 = arith.constant 0 : index
      %c0_17 = arith.constant 0 : index
      %19 = vector.load %arg7[%c0_15, %c0_16, %c0_17] : memref<1x8x32xbf16, #tpu.memory_space<vmem>>, vector<1x8x32xbf16>
      %20 = vector.shape_cast %19 : vector<1x8x32xbf16> to vector<8x32xbf16>
      %21 = vector.shape_cast %18 : vector<8x32xbf16> to vector<1x8x32xbf16>
      tpu.vector_store %arg7[%c0_15, %c0_16, %c0_17], %21 {strides = array<i32>} : memref<1x8x32xbf16, #tpu.memory_space<vmem>>, vector<1x8x32xbf16>,
    } else {
    }
    return
  }
  func.func @transform_0(%arg0: i32, %arg1: i32, %arg2: i32, %arg3: i32) -> (i32, i32, i32) {
    %c0_i32 = arith.constant 0 : i32
    return %arg0, %arg1, %arg3 : i32, i32, i32
  }
  func.func @transform_1(%arg0: i32, %arg1: i32, %arg2: i32, %arg3: i32) -> (i32, i32) {
    %c0_i32 = arith.constant 0 : i32
    return %arg3, %arg2 : i32, i32
  }
  func.func @transform_2(%arg0: i32, %arg1: i32, %arg2: i32, %arg3: i32) -> (i32, i32) {
    %c0_i32 = arith.constant 0 : i32
    %c0_i32_0 = arith.constant 0 : i32
    return %c0_i32, %arg2 : i32, i32
  }
  func.func @transform_3(%arg0: i32, %arg1: i32, %arg2: i32, %arg3: i32) -> (i32, i32, i32) {
    %c0_i32 = arith.constant 0 : i32
    return %arg0, %arg1, %arg2 : i32, i32, i32
  }
}

</mosaic_0001>

<bundles_post_ra>
// kernel: tpu_custom_call.1
= control target key start
LH: loop header
LB: loop body
LE: loop exit
PB: predicated region body
PF: predicated region fallthrough
CT: control target
= control target key end

     0   :  { %8 = vsyncpa [#allocation4], 0  ;;  %s879_s0 = inlined_call_operand.hbm [shape: f32[2,8,32], index: 0, kind: input, shape index: {}]   ;;  %s880_s1 = inlined_call_operand.hbm [shape: bf16[32,32], index: 1, kind: input, shape index: {}]   ;;  %s881_s2 = inlined_call_operand.vmem [shape: f32[1,32], index: 2, kind: input, shape index: {}]   ;;  %s882_s3 = inlined_call_operand.hbm [shape: bf16[2,8,32], index: 3, kind: output, shape index: {}]  }
   0x1   :  { %10 = vsyncpa [#allocation4 + $0x1], 0 }
   0x2   :  { %11 = vsyncpa [#allocation7], 0 }
   0x3   :  { %12 = vsyncpa [#allocation5], 0 }
   0x4   :  { %14 = vsyncpa [#allocation5 + $0x1], 0  ;;  %s732_s12 = smov 0   ;;  %s734_s13 = smov 0  }
   0x5   :  { %s736_s14 = smov 0   ;;  %s738_s15 = smov 0  }
   0x6   :  { %s740_s16 = smov 0   ;;  %s742_s17 = smov 0  }
   0x7 LB: > { %s456_s18 = sadd.s32 4294967295, %s706_s17   ;;  %p458_p0 = scmp.ge.s32.totalorder %s706_s17, 1  ;;  %s706_s17 = sphi %s742_s17, %s20_s17   ;;  %s702_s16 = sphi %s740_s16, %s893_s16   ;;  %s698_s15 = sphi %s738_s15, %s892_s15   ;;  %s694_s14 = sphi %s736_s14, %s891_s14   ;;  %s690_s13 = sphi %s734_s13, %s890_s13   ;;  %s686_s12 = sphi %s732_s12, %s889_s12  }
   0x8   : > { %p764_p1 = scmp.eq.s32.totalorder %s456_s18, 0  ;;  %p165_p2 = scmp.lt.s32.totalorder %s706_s17, 3 }
   0x9   : > { %s180_s22 = sshll.u32 %s880_s1, 4  ;;  %s708_s24 = smov [#allocation6]   ;;  %s181_s22 = int_to_ptr.hbm [resolvable:$true] %s180_s22 }
   0xa   : > { %p772_p3 = pnand %p458_p0, %p165_p2  ;;  %s182_s25 = sshll.u32 %s708_s24, 4  ;;  %s183_s25 = int_to_ptr.vmem [resolvable:$true] %s182_s25 }
   0xb   : > { %p461_p6 = scmp.ge.s32.totalorder %s706_s17, 2  ;;  %s709_s26 = smov 64  }
   0xc   : > { %p491_p4 = pneg %p772_p3  ;;  %s710_s27 = smov 4  }
   0xd   : > { %s457_s28 = sadd.s32 4294967294, %s706_s17   ;;  %s46_s29 = sadd.s32 1, %s702_s16 }
   0xe   : > { %p492_p5 = pnand %p491_p4, %p764_p1  ;;  %s57_s30 = sadd.s32 1, %s694_s14 }
   0xf   : > { %p48_p7 = scmp.ge.s32.totalorder %s46_s29, 2  ;;  %p64_p8 = scmp.ne.s32.totalorder %s694_s14, %s690_s13 }
  0x10   : > { %494 = dma.hbm_to_vmem [thread:$0]  (!%p492_p5), %s181_s22, 256, %s183_s25, [#allocation7], %s709_s26, %s709_s26, %s710_s27  }
  0x11   : > { %p65_p9 = scmp.eq.s32.totalorder %s706_s17, 0  ;;  %p70_p10 = scmp.ne.s32.totalorder %s690_s13, %s686_s12 }
  0x12   : > { %s895_s29 = smov (%p48_p7, %s46_s29), 0  ;;  %p152_p13 = scmp.eq.s32.totalorder %s456_s18, 1 }
  0x13   : > { %p791_p11 = por %p65_p9, %p64_p8  ;;  %p797_p12 = por %p764_p1, %p70_p10 }
  0x14   : > { %s50_s6 = ssub.s32 %s702_s16, %s895_s29  ;;  %p158_p2 = scmp.eq.s32.totalorder %s457_s28, 1 }
  0x15   : > { %p55_p0 = scmp.eq.s32.totalorder %s50_s6, 0  ;;  %p803_p4 = por %p152_p13, %p64_p8 }
  0x16   : > { %p504_p5 = scmp.lt.s32.totalorder %s706_s17, 2  ;;  %p811_p7 = por %p158_p2, %p70_p10 }
  0x17   : > { %s809_s8 = scalar_select %p55_p0, %s694_s14, %s57_s30  }
  0x18   : > { %s202_s10 = sand.u32 1, %s694_s14   ;;  %s463_s20 = sshll.u32 %s702_s16, 3 }
  0x19   : > { %s462_s11 = sshll.u32 %s202_s10, 3  ;;  %s212_s18 = scalar_lea.hbm %s879_s0, %s463_s20 }
  0x1a   : > { %s206_s24 = scalar_lea.vmem [#allocation3], %s462_s11  ;;  %s214_s26 = sshll.u32 %s212_s18, 4  ;;  %s215_s26 = int_to_ptr.hbm [resolvable:$true] %s214_s26 }
  0x1b   : > { %s216_s25 = sshll.u32 %s206_s24, 4  ;;  %p496_p8 = pnand %p504_p5, %p791_p11  ;;  %s217_s25 = int_to_ptr.vmem [resolvable:$true] %s216_s25 }
  0x1c   : > { %s203_s27 = scalar_lea.sflag [#allocation4], %s202_s10  ;;  %225 = sbr.rel (%p772_p3) target bundleno = 187 (0xbb), region = 32 }
  0x1d   : > { %498 = dma.hbm_to_vmem [thread:$0]  (!%p496_p8), %s215_s26, 128, %s217_s25, %s203_s27  }
  0x1e   : > { %s825_s28 = sand.u32 (!%p772_p3), 1, %s690_s13  }
  0x1f   : > { %s465_s30 = sshll.u32 (!%p772_p3), %s825_s28, 3  ;;  %s228_s6 = scalar_lea.sflag (!%p772_p3), [#allocation4], %s825_s28 }
  0x20   : > { %s231_s11 = scalar_lea.vmem (!%p772_p3), [#allocation3], %s465_s30 }
  0x21   : > { %673 = dma.done.wait (%p797_p12), %s228_s6, 128  }
  0x22   : > { %675 = vsyncadd (%p797_p12), %s228_s6, 4294967168 }
  0x23   : > { %677 = dma.done.wait (%p764_p1), [#allocation7], 256  }
  0x24   : > { %679 = vsyncadd (%p764_p1), [#allocation7], 4294967040  ;;  %vm272_vm0 = vcmask 261120   ;;  %v711_v0 = vmov 0.0   ;;  %v482_v1 = vld [vmem:[#allocation6 + $0x8] sm:$0xff]  ;;  %v481_v2 = vld [vmem:[#allocation6] sm:$0xff] }
  0x25   : > { %273 = vst.msk [vmem:[#allocation2] sm:$0xff] %vm272_vm0, %v711_v0  ;;  %303 = vmatpush.bf16.msra.mxu0 %v482_v1  ;;  %v275_v3 = vld [vmem:[%s231_s11] sm:$0xff]  ;;  %s467_s23 = sshll.u32 %s825_s28, 2  ;;  %s478_s19 = sshll.u32 %s698_s15, 2  ;;  %v559_v8 = vld [vmem:[%s881_s2] ss:$0 sm:$0xff] }
  0x26   : > { %v276_v4 = vpack.c.bf16 %v275_v3, %v275_v3  ;;  %s337_s21 = scalar_lea.hbm %s882_s3, %s478_s19  ;;  %s262_s22 = scalar_lea.vmem [#allocation8], %s467_s23  ;;  %vm322_vm1 = vcmask 257024  }
  0x27   : > { %s339_s18 = sshll.u32 %s262_s22, 4  ;;  %s341_s24 = sshll.u32 %s337_s21, 4  ;;  %s340_s18 = int_to_ptr.vmem [resolvable:$true] %s339_s18  ;;  %s342_s24 = int_to_ptr.hbm [resolvable:$true] %s341_s24 }
  0x28   : > { %s325_s15 = scalar_lea.sflag [#allocation5], %s825_s28  ;;  %s634_s25 = sshra.s32 %s342_s24, 4  ;;  %s635_s25 = int_to_ptr.hbm [resolvable:$true] %s634_s25 }
  0x29   : > { %304 = vmatpush.bf16.msra.mxu0 %v481_v2  ;;  %s636_s26 = scalar_lea.hbm %s635_s25, 4  ;;  %s640_s6 = scalar_lea.hbm %s882_s3, 8 }
  0x2a   : > { %p637_p1 = scmp.ne.s32.totalorder %s635_s25, %s636_s26  ;;  %p641_p10 = scmp.lt.s32.totalorder %s635_s25, %s882_s3 }
  0x2b   : > { %p642_p11 = scmp.lt.s32.totalorder %s640_s6, %s636_s26 }
  0x2c   : > { %476 = vmatmul.msk.bf16.vlgmr.msra.gmra.mxu0 %vm272_vm0, %v276_v4  ;;  %v274_v5 = vld [vmem:[#allocation2] sm:$0xff]  ;;  %p638_p3 = pnand %p637_p1, %p803_p4 }
  0x2d   : > { %p643_p12 = por %p642_p11, %p641_p10 }
  0x2e   : > { %p639_p9 = pneg %p638_p3 }
  0x30   : > { %p644_p13 = pnand %p643_p12, %p639_p9 }
  0xa9   : > { %v306_v6 = vpop.f32.mrf.mxu0 }
  0xaa   : > { %v310_v7 = vadd.f32 %v306_v6, %v274_v5 }
  0xac   : > { %311 = vst.msk [vmem:[#allocation2] sm:$0xff] %vm272_vm0, %v310_v7 }
  0xb1   : > { %v308_v9 = vpop.f32.mrf.mxu0 }
  0xb3   : > { %v315_v10 = vld [vmem:[#allocation2] sm:$0xff] }
  0xb4   : > { %v320_v11 = vadd.f32 %v559_v8, %v315_v10 }
  0xb6   : > { %v321_v12 = vpack.c.bf16 %v320_v11, %v320_v11 }
  0xb8   : > { %323 = vst.msk [vmem:[%s262_s22] sm:$0xf] %vm322_vm1, %v321_v12 }
  0xb9   : > { %647 = shalt.err (!%p644_p13)
}
  0xba   : > { %489 = dma.vmem_to_hbm [thread:$0]  (%p803_p4), %s340_s18, 64, %s342_s24, %s325_s15  }
  0xbb PF: > { %s353_s28 = sand.u32 1, %s686_s12   ;;  %p500_p0 = pnand %p461_p6, %p811_p7 }
  0xbc   : > { %s354_s19 = scalar_lea.sflag [#allocation5], %s353_s28 }
  0xbd   : > { %p501_p2 = pneg %p500_p0 }
  0xbf   : > { %681 = dma.done.wait (%p501_p2), %s354_s19, 64  }
  0xc0   : > { %683 = vsyncadd (%p501_p2), %s354_s19, 4294967232  ;;  %s20_s17 = sadd.s32 1, %s706_s17   ;;  %s889_s12 = smov %s690_s13 }
  0xc1   : > { %p17_p5 = scmp.ge.s32.totalorder %s20_s17, 4   ;;  %s890_s13 = smov %s694_s14 }
  0xc2   : > { %s891_s14 = smov %s809_s8  ;;  %s892_s15 = smov %s702_s16 }
  0xc3   : > { %s893_s16 = smov %s895_s29  ;;  %19 = sbr.rel (!%p17_p5) target bundleno = 7 (0x7), region = 93 }
  0xc8   :  { %360 = vsyncpa [#allocation4], 1 }
  0xc9   :  { %362 = vsyncpa [#allocation4 + $0x1], 1 }
  0xca   :  { %363 = vsyncpa [#allocation7], 1 }
  0xcb   :  { %364 = vsyncpa [#allocation5], 1 }
  0xcc   :  { %366 = vsyncpa [#allocation5 + $0x1], 1 }

</bundles_post_ra>
